<compile_context>
chip_gen: v7x
topology: tpu7x:2x2x1
jax: 0.10.0
libtpu: 0.0.40
codegen_flags: <defaults>
</compile_context>

<pallas_src>
import jax
import jax.numpy as jnp
import numpy as np
from jax.experimental import pallas as pl
from jax.experimental.pallas import tpu as pltpu


# ----------------------------------------------------------------------------
# Fused regressor-head kernel:
#   y = sigmoid( relu(x @ W1 + b1) . w2_row + b2 )
# ----------------------------------------------------------------------------
def regressor_kernel(x_ref, w1_ref, b1_ref, w2_ref, b2_ref, o_ref):
    # Linear(H, 128): bf16 MXU matmul with f32 accumulation.
    h = jnp.dot(x_ref[...], w1_ref[...], preferred_element_type=jnp.float32)
    h = jnp.maximum(h + b1_ref[...], 0.0)                 # bias + ReLU (f32, VPU)

    # Dropout(0.1): identity in inference mode.

    # Linear(128, 1): VPU multiply with the (1, 128) W2 row + XLU lane-reduce
    # (an N=1 MXU matmul would waste the MXU and need a padded (128,1) weight).
    y = jnp.sum(h * w2_ref[...], axis=-1, keepdims=True) + b2_ref[0, 0]

    # Sigmoid: exp on EUP, approximate reciprocal also on EUP (free slot).
    o_ref[...] = pl.reciprocal(1.0 + jnp.exp(-y), approx=True)


def regressor_head(cls_token, w1, b1, w2_row, b2, *, tb=512):
    """cls_token: (B, H) f32. w1: (H, 128). b1: (1, 128) or (128,).
    w2_row: (1, 128) or (128,) (PyTorch nn.Linear(128,1).weight layout).
    b2: scalar-like.  Returns (B,) f32 scores in (0, 1)."""
    B, H = cls_token.shape
    mid = w1.shape[1]

    # bf16 packs 16 rows per sublane group -> tile must be a multiple of 16.
    # Clamp the tile to the (rounded-up) batch so tiny batches stay cheap,
    # while large batches get big tiles and several grid steps (v7x 2 TCs).
    tb = max(16, min(tb, ((B + 15) // 16) * 16))
    num_blocks = pl.cdiv(B, tb)
    B_pad = num_blocks * tb

    # bf16 inputs for the dominant HBM traffic (x tile) and the MXU weight.
    x = cls_token.astype(jnp.bfloat16)
    if B_pad != B:
        x = jnp.pad(x, ((0, B_pad - B), (0, 0)))
    w1_bf16 = w1.astype(jnp.bfloat16)
    b1 = jnp.asarray(b1, jnp.float32).reshape(1, mid)
    w2_row = jnp.asarray(w2_row, jnp.float32).reshape(1, mid)
    b2 = jnp.asarray(b2, jnp.float32).reshape(1, 1)

    out = pl.pallas_call(
        regressor_kernel,
        out_shape=jax.ShapeDtypeStruct((B_pad, 1), jnp.float32),
        grid_spec=pltpu.PrefetchScalarGridSpec(
            num_scalar_prefetch=0,
            grid=(num_blocks,),
            in_specs=[
                pl.BlockSpec((tb, H), lambda i: (i, 0)),       # x tile (bf16)
                pl.BlockSpec((H, mid), lambda i: (0, 0)),      # W1 (bf16, resident)
                pl.BlockSpec((1, mid), lambda i: (0, 0)),      # b1 (f32)
                pl.BlockSpec((1, mid), lambda i: (0, 0)),      # w2 row (f32)
                pl.BlockSpec(memory_space=pltpu.MemorySpace.SMEM),  # b2 scalar
            ],
            out_specs=pl.BlockSpec((tb, 1), lambda i: (i, 0)),
        ),
        compiler_params=pltpu.CompilerParams(
            dimension_semantics=("parallel",)),
    )(x, w1_bf16, b1, w2_row, b2)

    # Drop padded rows, then .squeeze() as in the PyTorch module.
    return jnp.squeeze(out[:B], axis=-1)


# Pure-JAX reference (matches the kernel's bf16 input precision).
def regressor_head_ref(cls_token, w1, b1, w2_row, b2):
    x = cls_token.astype(jnp.bfloat16).astype(jnp.float32)
    w1f = w1.astype(jnp.bfloat16).astype(jnp.float32)
    h = jnp.maximum(x @ w1f + jnp.asarray(b1).reshape(1, -1), 0.0)
    y = jnp.sum(h * jnp.asarray(w2_row).reshape(1, -1), axis=-1)
    y = y + jnp.asarray(b2).reshape(())
    return jax.nn.sigmoid(y)


if __name__ == "__main__":
    # Small shapes consistent with the module's forward:
    #   batch of (description, status) pairs -> CLS embedding (B, H)
    B = 8            # batch of text pairs
    H = 256          # encoder hidden size (768 for xlm-roberta-base; small here)
    MID = 128        # regressor intermediate width (fixed by the module)

    key = jax.random.PRNGKey(0)
    k_cls, k_w1, k_b1, k_w2, k_b2 = jax.random.split(key, 5)

    # Stand-in for encoder(**tokens).last_hidden_state[:, 0, :]
    cls_token = jax.random.normal(k_cls, (B, H), dtype=jnp.float32)

    # nn.Linear-like uniform fan-in init.  W1 stored as (in, out); W2 kept in
    # PyTorch's natural (1, 128) row layout.
    lim1 = 1.0 / np.sqrt(H)
    lim2 = 1.0 / np.sqrt(MID)
    w1 = jax.random.uniform(k_w1, (H, MID), jnp.float32, -lim1, lim1)
    b1 = jax.random.uniform(k_b1, (1, MID), jnp.float32, -lim1, lim1)
    w2 = jax.random.uniform(k_w2, (1, MID), jnp.float32, -lim2, lim2)
    b2 = jax.random.uniform(k_b2, (1, 1), jnp.float32, -lim2, lim2)

    scores = regressor_head(cls_token, w1, b1, w2, b2)
    scores = jax.block_until_ready(scores)

    ref = regressor_head_ref(cls_token, w1, b1, w2, b2)
    np.testing.assert_allclose(np.asarray(scores), np.asarray(ref),
                               rtol=1e-2, atol=1e-3)
    assert scores.shape == (B,)

    print("KERNEL_OK")
</pallas_src>

<mosaic_0001>
module attributes {stable_mosaic.version = 11 : i64} {
  func.func @regressor_kernel(%arg0: i32, %arg1: memref<16x256xbf16, #tpu.memory_space<vmem>>, %arg2: memref<256x128xbf16, #tpu.memory_space<vmem>>, %arg3: memref<1x128xf32, #tpu.memory_space<vmem>>, %arg4: memref<1x128xf32, #tpu.memory_space<vmem>>, %arg5: memref<1x1xf32, #tpu.memory_space<smem>>, %arg6: memref<16x1xf32, #tpu.memory_space<vmem>>) attributes {dimension_semantics = [#tpu.dimension_semantics<parallel>], iteration_bounds = array<i64: 1>, scalar_prefetch = 0 : i64, scratch_operands = 0 : i64, tpu.core_type = #tpu.core_type<tc>, window_params = [{transform_indices = @transform_0, window_bounds = array<i64: 16, 256>}, {pipeline_mode = #tpu.pipeline_mode<synchronous>, transform_indices = @transform_1, window_bounds = array<i64: 256, 128>}, {pipeline_mode = #tpu.pipeline_mode<synchronous>, transform_indices = @transform_2, window_bounds = array<i64: 1, 128>}, {pipeline_mode = #tpu.pipeline_mode<synchronous>, transform_indices = @transform_3, window_bounds = array<i64: 1, 128>}, {transform_indices = @transform_4, window_bounds = array<i64: 1, 1>}, {transform_indices = @transform_5, window_bounds = array<i64: 16, 1>}]} {
    %c0 = arith.constant 0 : index
    %c0_0 = arith.constant 0 : index
    %0 = vector.load %arg1[%c0, %c0_0] : memref<16x256xbf16, #tpu.memory_space<vmem>>, vector<16x256xbf16>
    %c0_1 = arith.constant 0 : index
    %c0_2 = arith.constant 0 : index
    %1 = vector.load %arg2[%c0_1, %c0_2] : memref<256x128xbf16, #tpu.memory_space<vmem>>, vector<256x128xbf16>
    %cst = arith.constant dense<0.000000e+00> : vector<16x128xf32>
    %2 = tpu.matmul %0, %1, %cst {dimension_numbers = #tpu.dot_dimension_numbers<[1], [0], [0], [1], [0, 0, 1, 1], [], []>} : vector<16x256xbf16>, vector<256x128xbf16>, vector<16x128xf32> -> vector<16x128xf32>
    %c0_3 = arith.constant 0 : index
    %c0_4 = arith.constant 0 : index
    %3 = vector.load %arg3[%c0_3, %c0_4] : memref<1x128xf32, #tpu.memory_space<vmem>>, vector<1x128xf32>
    %4 = vector.broadcast %3 : vector<1x128xf32> to vector<16x128xf32>
    %5 = arith.addf %2, %4 : vector<16x128xf32>
    %cst_5 = arith.constant 0.000000e+00 : f32
    %6 = vector.broadcast %cst_5 : f32 to vector<16x128xf32>
    %7 = arith.maximumf %5, %6 : vector<16x128xf32>
    %c0_6 = arith.constant 0 : index
    %c0_7 = arith.constant 0 : index
    %8 = vector.load %arg4[%c0_6, %c0_7] : memref<1x128xf32, #tpu.memory_space<vmem>>, vector<1x128xf32>
    %9 = vector.broadcast %8 : vector<1x128xf32> to vector<16x128xf32>
    %10 = arith.mulf %7, %9 : vector<16x128xf32>
    %cst_8 = arith.constant dense<0.000000e+00> : vector<16xf32>
    %11 = vector.multi_reduction <add>, %10, %cst_8 [1] : vector<16x128xf32> to vector<16xf32>
    %12 = vector.shape_cast %11 : vector<16xf32> to vector<16x1xf32>
    %c0_9 = arith.constant 0 : index
    %c0_10 = arith.constant 0 : index
    %13 = memref.load %arg5[%c0_9, %c0_10] : memref<1x1xf32, #tpu.memory_space<smem>>
    %14 = vector.broadcast %13 : f32 to vector<16x1xf32>
    %15 = arith.addf %12, %14 : vector<16x1xf32>
    %cst_11 = arith.constant 0.000000e+00 : f32
    %16 = vector.broadcast %cst_11 : f32 to vector<16x1xf32>
    %17 = arith.subf %16, %15 : vector<16x1xf32>
    %18 = math.exp %17 : vector<16x1xf32>
    %cst_12 = arith.constant 1.000000e+00 : f32
    %19 = vector.broadcast %cst_12 : f32 to vector<16x1xf32>
    %20 = arith.addf %19, %18 : vector<16x1xf32>
    %21 = tpu.reciprocal %20 {approx = true} : vector<16x1xf32> -> vector<16x1xf32>
    %c0_13 = arith.constant 0 : index
    %c0_14 = arith.constant 0 : index
    %22 = vector.load %arg6[%c0_13, %c0_14] : memref<16x1xf32, #tpu.memory_space<vmem>>, vector<16x1xf32>
    tpu.vector_store %arg6[%c0_13, %c0_14], %21 {strides = array<i32>} : memref<16x1xf32, #tpu.memory_space<vmem>>, vector<16x1xf32>,
    return
  }
  func.func @transform_0(%arg0: i32) -> (i32, i32) {
    %c0_i32 = arith.constant 0 : i32
    %c0_i32_0 = arith.constant 0 : i32
    return %arg0, %c0_i32 : i32, i32
  }
  func.func @transform_1(%arg0: i32) -> (i32, i32) {
    %c0_i32 = arith.constant 0 : i32
    %c0_i32_0 = arith.constant 0 : i32
    %c0_i32_1 = arith.constant 0 : i32
    return %c0_i32, %c0_i32_0 : i32, i32
  }
  func.func @transform_2(%arg0: i32) -> (i32, i32) {
    %c0_i32 = arith.constant 0 : i32
    %c0_i32_0 = arith.constant 0 : i32
    %c0_i32_1 = arith.constant 0 : i32
    return %c0_i32, %c0_i32_0 : i32, i32
  }
  func.func @transform_3(%arg0: i32) -> (i32, i32) {
    %c0_i32 = arith.constant 0 : i32
    %c0_i32_0 = arith.constant 0 : i32
    %c0_i32_1 = arith.constant 0 : i32
    return %c0_i32, %c0_i32_0 : i32, i32
  }
  func.func @transform_4(%arg0: i32) -> (i32, i32) {
    %c0_i32 = arith.constant 0 : i32
    %c0_i32_0 = arith.constant 0 : i32
    %c0_i32_1 = arith.constant 0 : i32
    return %c0_i32, %c0_i32_0 : i32, i32
  }
  func.func @transform_5(%arg0: i32) -> (i32, i32) {
    %c0_i32 = arith.constant 0 : i32
    %c0_i32_0 = arith.constant 0 : i32
    return %arg0, %c0_i32 : i32, i32
  }
}

</mosaic_0001>

<bundles_post_ra>
// kernel: tpu_custom_call.1
= control target key start
LH: loop header
LB: loop body
LE: loop exit
PB: predicated region body
PF: predicated region fallthrough
CT: control target
= control target key end

     0   :  { %11 = vsyncpa [#allocation4], 0  ;;  %s474_s0 = inlined_call_operand.hbm [shape: bf16[16,256], index: 0, kind: input, shape index: {}]   ;;  %s475_s1 = inlined_call_operand.hbm [shape: bf16[256,128], index: 1, kind: input, shape index: {}]   ;;  %s476_s2 = inlined_call_operand.vmem [shape: f32[1,128], index: 2, kind: input, shape index: {}]   ;;  %s477_s3 = inlined_call_operand.vmem [shape: f32[1,128], index: 3, kind: input, shape index: {}]   ;;  %s478_s4 = inlined_call_operand.<no memory space> [shape: f32[1,1], index: 4, kind: input, shape index: {}]   ;;  %s479_s5 = inlined_call_operand.vmem [shape: f32[16,1], index: 5, kind: output, shape index: {}]  }
   0x1   :  { %12 = vsyncpa [#allocation6], 0  ;;  %s399_s18 = smov [#allocation3]   ;;  %s351_s22 = scalar_lea.hbm %s474_s0, 256 }
   0x2   :  { %s18_s19 = sshll.u32 %s399_s18, 4  ;;  %p352_p0 = scmp.ne.s32.totalorder %s474_s0, %s351_s22  ;;  %s19_s19 = int_to_ptr.vmem [resolvable:$true] %s18_s19 }
   0x3   :  { %p355_p1 = scmp.lt.u32.totalorder %s351_s22, %s474_s0 }
   0x5   :  { %p357_p2 = pnand %p355_p1, %p352_p0 }
   0x7   :  { %360 = shalt.err (!%p357_p2)
}
   0x8   :  { %s361_s27 = scalar_lea.vmem %s19_s19, 256  ;;  %p366_p4 = scmp.lt.s32.totalorder %s19_s19, %s19_s19 }
   0x9   :  { %p362_p3 = scmp.ne.s32.totalorder %s19_s19, %s361_s27  ;;  %p367_p5 = scmp.lt.s32.totalorder %s361_s27, %s361_s27 }
   0xb   :  { %p368_p6 = por %p367_p5, %p366_p4 }
   0xd   :  { %p369_p7 = pnand %p368_p6, %p362_p3 }
   0xf   :  { %372 = shalt.err (!%p369_p7)
}
  0x10   :  { %s400_s28 = smov 128   ;;  %s401_s29 = smov 8  }
  0x11   :  { %24 = dma.hbm_to_vmem [thread:$0]  %s474_s0, 256, %s19_s19, [#allocation4], %s400_s28, %s400_s28, %s401_s29  }
  0x12   :  { %s402_s7 = smov [#allocation5]   ;;  %s373_s11 = scalar_lea.hbm %s475_s1, 2048 }
  0x13   :  { %s30_s8 = sshll.u32 %s402_s7, 4  ;;  %p374_p8 = scmp.ne.s32.totalorder %s475_s1, %s373_s11  ;;  %s31_s8 = int_to_ptr.vmem [resolvable:$true] %s30_s8 }
  0x14   :  { %p377_p9 = scmp.lt.u32.totalorder %s373_s11, %s475_s1 }
  0x16   :  { %p379_p10 = pnand %p377_p9, %p374_p8 }
  0x18   :  { %382 = shalt.err (!%p379_p10)
}
  0x19   :  { %s383_s16 = scalar_lea.vmem %s31_s8, 2048  ;;  %p388_p12 = scmp.lt.s32.totalorder %s31_s8, %s31_s8 }
  0x1a   :  { %p384_p11 = scmp.ne.s32.totalorder %s31_s8, %s383_s16  ;;  %p389_p13 = scmp.lt.s32.totalorder %s383_s16, %s383_s16 }
  0x1c   :  { %p390_p0 = por %p389_p13, %p388_p12 }
  0x1e   :  { %p391_p1 = pnand %p390_p0, %p384_p11 }
  0x20   :  { %394 = shalt.err (!%p391_p1)
}
  0x21   :  { %s403_s0 = smov 64   ;;  %s404_s17 = smov 4  }
  0x22   :  { %36 = dma.hbm_to_vmem [thread:$0]  %s475_s1, 2048, %s31_s8, [#allocation6], %s403_s0, %s403_s0, %s404_s17  }
  0x23   :  { %395 = dma.done.wait [#allocation4], 256  }
  0x24   :  { %396 = vsyncadd [#allocation4], 4294967040 }
  0x25   :  { %397 = dma.done.wait [#allocation6], 2048  }
  0x26   :  { %398 = vsyncadd [#allocation6], 4294965248  ;;  %v324_v0 = vld [vmem:[#allocation5 + $0x40] sm:$0xff]   ;;  %v326_v2 = vld [vmem:[#allocation5 + $0x48] sm:$0xff]   ;;  %v254_v32 = vstv %s478_s4  ;;  %vm267_vm0 = vcmask 7168  }
  0x27   :  { %v325_v1 = vld [vmem:[#allocation5] sm:$0xff]   ;;  %296 = vmatprep.subr.bf16.mxu0 %v324_v0  ;;  %v327_v3 = vld [vmem:[#allocation5 + $0x8] sm:$0xff]   ;;  %v328_v4 = vld [vmem:[#allocation5 + $0x50] sm:$0xff]  }
  0x28   :  { %297 = vmatpush3.bf16.msra.mxu0 %v325_v1  ;;  %v329_v5 = vld [vmem:[#allocation5 + $0x10] sm:$0xff]   ;;  %v330_v6 = vld [vmem:[#allocation5 + $0x58] sm:$0xff]   ;;  %v332_v8 = vld [vmem:[#allocation5 + $0x60] sm:$0xff]  }
  0x29   :  { %298 = vmatprep.subr.bf16.mxu0 %v326_v2  ;;  %v331_v7 = vld [vmem:[#allocation5 + $0x18] sm:$0xff]   ;;  %v333_v9 = vld [vmem:[#allocation5 + $0x20] sm:$0xff]   ;;  %v334_v10 = vld [vmem:[#allocation5 + $0x68] sm:$0xff]  }
  0x2a   :  { %v342_v11 = vld [vmem:[#allocation3 + $0x4] ss:$8 sps:$4 sm:$0xff]   ;;  %v335_v12 = vld [vmem:[#allocation5 + $0x28] sm:$0xff]   ;;  %v340_v17 = vld [vmem:[#allocation3] ss:$8 sps:$4 sm:$0xff]  }
  0x2b   :  { %229 = vmatprep.mubr.bf16.mxu0 %v342_v11  ;;  %v336_v13 = vld [vmem:[#allocation5 + $0x70] sm:$0xff]   ;;  %v338_v15 = vld [vmem:[#allocation5 + $0x78] sm:$0xff]  }
  0x2c   :  { %299 = vmatpush3.bf16.msra.mxu0 %v327_v3  ;;  %v337_v14 = vld [vmem:[#allocation5 + $0x30] sm:$0xff]   ;;  %v339_v16 = vld [vmem:[#allocation5 + $0x38] sm:$0xff]  }
  0x2d   :  { %300 = vmatprep.subr.bf16.mxu0 %v328_v4  ;;  %v276_v20 = vld [vmem:[%s476_s2] ss:$0 sm:$0xff] }
  0x2e   :  { %v295_v26 = vld [vmem:[%s477_s3] ss:$0 sm:$0xff] }
  0x30   :  { %301 = vmatpush3.bf16.msra.mxu0 %v329_v5 }
  0x31   :  { %302 = vmatprep.subr.bf16.mxu0 %v330_v6 }
  0x34   :  { %303 = vmatpush3.bf16.msra.mxu0 %v331_v7 }
  0x35   :  { %304 = vmatprep.subr.bf16.mxu0 %v332_v8 }
  0x38   :  { %305 = vmatpush3.bf16.msra.mxu0 %v333_v9 }
  0x39   :  { %306 = vmatprep.subr.bf16.mxu0 %v334_v10 }
  0x3c   :  { %307 = vmatpush3.bf16.msra.mxu0 %v335_v12 }
  0x3d   :  { %308 = vmatprep.subr.bf16.mxu0 %v336_v13 }
  0x40   :  { %309 = vmatpush3.bf16.msra.mxu0 %v337_v14 }
  0x41   :  { %310 = vmatprep.subr.bf16.mxu0 %v338_v15 }
  0x44   :  { %311 = vmatpush3.bf16.msra.mxu0 %v339_v16 }
  0x47   :  { %230 = vmatmul.mubr.bf16.vlgmr.msra.gmra.mrb[0].mxu0 %v340_v17 }
 0x11a   :  { %v312_v18 = vpop.f32.mrb[0].mxu0 }
 0x11b   :  { %v313_v19 = vpop.f32.mrb[1].mxu0 }
 0x11c   :  { %v314_v21 = vadd.f32 %v313_v19, %v312_v18  ;;  %v315_v22 = vpop.f32.mrb[2].mxu0 }
 0x11d   :  { %v316_v23 = vpop.f32.mrb[3].mxu0 }
 0x11e   :  { %v317_v24 = vadd.f32 %v316_v23, %v315_v22  ;;  %v232_v25 = vadd.f32 %v314_v21, %v276_v20 }
 0x120   :  { %v235_v27 = vadd.f32 %v317_v24, %v276_v20  ;;  %v238_v28 = vmax.f32 %v232_v25, 0.0 }
 0x122   :  { %v239_v29 = vmax.f32 %v235_v27, 0.0  ;;  %v247_v30 = vmul.f32 %v295_v26, %v238_v28 }
 0x124   :  { %249 = vadd.xlane.f32.xlu0 %v247_v30  ;;  %v248_v31 = vmul.f32 %v295_v26, %v239_v29 }
 0x128   :  { %251 = vadd.xlane.f32.xlu0 %v248_v31 }
 0x1b1   :  { %v250_v33 = vpop.xlane.xlu0 %249 }
 0x1b2   :  { %v255_v34 = vadd.f32 %v254_v32, %v250_v33 }
 0x1b4   :  { %v257_v35 = vsub.f32 0.0, %v255_v34 }
 0x1b5   :  { %v252_v36 = vpop.xlane.xlu0 %251 }
 0x1b6   :  { %v259_v37 = vmul.f32 1.442695, %v257_v35  ;;  %v256_v38 = vadd.f32 %v254_v32, %v252_v36 }
 0x1b8   :  { %343 = vpow2.f32 %v259_v37  ;;  %v258_v39 = vsub.f32 0.0, %v256_v38 }
 0x1ba   :  { %v261_v40 = vmul.f32 1.442695, %v258_v39 }
 0x1bc   :  { %345 = vpow2.f32 %v261_v40 }
 0x1c2   :  { %v344_v41 = vpop.eup %343 }
 0x1c3   :  { %v263_v42 = vadd.f32 1.0, %v344_v41 }
 0x1c5   :  { %347 = vrcp.f32 %v263_v42 }
 0x1c6   :  { %v346_v43 = vpop.eup %345 }
 0x1c7   :  { %v264_v44 = vadd.f32 1.0, %v346_v43 }
 0x1c9   :  { %349 = vrcp.f32 %v264_v44 }
 0x1cf   :  { %v348_v45 = vpop.eup %347 }
 0x1d0   :  { %268 = vst.msk [vmem:[%s479_s5] sm:$0xff] %vm267_vm0, %v348_v45 }
 0x1d3   :  { %v350_v46 = vpop.eup %349 }
 0x1d4   :  { %269 = vst.msk [vmem:[%s479_s5 + $0x8] sm:$0xff] %vm267_vm0, %v350_v46 }
 0x1d5   :  { %274 = vsyncpa [#allocation4], 1 }
 0x1d6   :  { %275 = vsyncpa [#allocation6], 1 }

</bundles_post_ra>
